<compile_context>
chip_gen: v7x
topology: tpu7x:2x2x1
jax: 0.10.0
libtpu: 0.0.40
codegen_flags: <defaults>
</compile_context>

<pallas_src>
import jax
import jax.numpy as jnp
from jax.experimental import pallas as pl
from jax.experimental.pallas import tpu as pltpu

_PACK = 16                              # batch rows folded into one lane-dense output row
_DEFAULT_VMEM_BUDGET = 24 * 1024 * 1024  # conservative working-set budget (v7x-safe)


# ---------------------------------------------------------------------------
# Kernels
# ---------------------------------------------------------------------------
def _mlp_compute(x_ref, w1_ref, b1_ref, w2_ref, b2_ref, w3_ref, b3_ref):
    # f32 load of X from VMEM, bf16 cast on the VPU (pure slack: mem-bound kernel).
    x = x_ref[...].astype(jnp.bfloat16)
    h1 = jnp.dot(x, w1_ref[...], preferred_element_type=jnp.float32) + b1_ref[...]
    h1 = jnp.maximum(h1, 0.0)
    h2 = jnp.dot(h1.astype(jnp.bfloat16), w2_ref[...],
                 preferred_element_type=jnp.float32) + b2_ref[...]
    h2 = jnp.maximum(h2, 0.0)
    z = jnp.dot(h2.astype(jnp.bfloat16), w3_ref[...],
                preferred_element_type=jnp.float32) + b3_ref[...]
    return jax.nn.sigmoid(z)            # exp rides the EUP slot; stays f32


def _plain_kernel(x_ref, w1, b1, w2, b2, w3, b3, o_ref):
    o_ref[...] = _mlp_compute(x_ref, w1, b1, w2, b2, w3, b3).astype(o_ref.dtype)


def _packed_kernel(x_ref, w1, b1, w2, b2, w3, b3, o_ref, z_ref):
    # z_ref: (batch_tile, out_dim) f32 scratch.  Pack 16 consecutive batch rows
    # into one 16*out_dim (=128)-lane output row:
    #   o[r, out_dim*k + j] = z[16*r + k, j]
    # so the wrapper-side reshape (B//16, 16*out_dim) -> (B, out_dim) is a free
    # row-major view, and both the vst's and the HBM writeback DMA are dense.
    y = _mlp_compute(x_ref, w1, b1, w2, b2, w3, b3)
    z_ref[...] = y
    rows = z_ref.shape[0] // _PACK
    pieces = [z_ref[pl.ds(k, rows, stride=_PACK), :] for k in range(_PACK)]
    o_ref[...] = jnp.concatenate(pieces, axis=-1).astype(o_ref.dtype)


# ---------------------------------------------------------------------------
# Tiling / wrapper
# ---------------------------------------------------------------------------
def _round_up(x, m):
    return ((x + m - 1) // m) * m


def _round_down(x, m):
    return (x // m) * m


def _pick_batch_tile(B, num_in, hidden, out_dim, vmem_budget_bytes):
    """Largest batch tile whose working set fits the VMEM budget.

    Counts the f32 X block (double-buffered), its bf16 cast, the f32 h1/h2
    intermediates plus their bf16 recasts, the sigmoid result, the
    double-buffered output block, and the single-buffered bf16 weights."""
    per_row = 2 * num_in * 4            # X f32 block, double-buffered
    per_row += num_in * 2               # in-kernel bf16 cast of X
    per_row += 2 * hidden * (4 + 2)     # h1, h2 f32 + bf16 recasts for the MXU
    per_row += out_dim * 4              # sigmoid result / packing scratch
    per_row += 2 * out_dim * 4          # output block, double-buffered
    weight_bytes = (num_in * hidden + hidden * hidden + hidden * out_dim) * 2
    weight_bytes += (2 * hidden + out_dim) * 4
    avail = max(vmem_budget_bytes - weight_bytes, 16 * per_row)
    bt = min(avail // per_row, 2048)    # >=1024-row tiles already sit near the HBM roofline
    if B > 256:
        # keep >=2 grid steps so the batch shards across both TensorCores (v7x)
        bt = min(bt, _round_up(pl.cdiv(B, 2), 128))
    if bt >= B:
        return B
    if bt >= 128:
        return _round_down(bt, 128)
    return max(16, _round_down(bt, 16))


def _forward_impl(x, params, *, batch_tile, pack, single_buffer, out_dtype,
                  vmem_limit_bytes):
    w1, b1, w2, b2, w3, b3 = (params[k] for k in ("w1", "b1", "w2", "b2", "w3", "b3"))
    B, num_in = x.shape
    hidden = w1.shape[1]
    out_dim = w3.shape[1]
    grid = (pl.cdiv(B, batch_tile),)

    def const_spec(shape):
        # Constant (0, 0) index_map: block is resident across the whole grid.
        # Single-buffering halves its VMEM footprint (matters at large hidden).
        if single_buffer:
            return pl.BlockSpec(shape, lambda i: (0, 0), pipeline_mode=pl.Buffered(1))
        return pl.BlockSpec(shape, lambda i: (0, 0))

    in_specs = [
        pl.BlockSpec((batch_tile, num_in), lambda i: (i, 0)),   # only batch is tiled
        const_spec((num_in, hidden)),
        const_spec((1, hidden)),
        const_spec((hidden, hidden)),
        const_spec((1, hidden)),
        const_spec((hidden, out_dim)),
        const_spec((1, out_dim)),
    ]

    if pack is None:
        out_shape = jax.ShapeDtypeStruct((B, out_dim), out_dtype)
        out_spec = pl.BlockSpec((batch_tile, out_dim), lambda i: (i, 0))
        kernel = _plain_kernel
        scratch = []
    else:
        out_shape = jax.ShapeDtypeStruct((B // pack, pack * out_dim), out_dtype)
        out_spec = pl.BlockSpec((batch_tile // pack, pack * out_dim), lambda i: (i, 0))
        kernel = _packed_kernel
        scratch = [pltpu.VMEM((batch_tile, out_dim), jnp.float32)]

    cost = pl.CostEstimate(
        flops=2 * B * (num_in * hidden + hidden * hidden + hidden * out_dim),
        transcendentals=B * out_dim,
        bytes_accessed=int(x.size * x.dtype.itemsize
                           + B * out_dim * jnp.dtype(out_dtype).itemsize
                           + sum(a.size * a.dtype.itemsize
                                 for a in (w1, b1, w2, b2, w3, b3))),
    )

    y = pl.pallas_call(
        kernel,
        out_shape=out_shape,
        grid_spec=pltpu.PrefetchScalarGridSpec(
            num_scalar_prefetch=0,
            grid=grid,
            in_specs=in_specs,
            out_specs=out_spec,
            scratch_shapes=scratch,
        ),
        compiler_params=pltpu.CompilerParams(
            # Batch tiles are independent -> shard across the two TCs on v7x.
            dimension_semantics=("parallel",),
            vmem_limit_bytes=vmem_limit_bytes,
        ),
        cost_estimate=cost,
    )(x, w1, b1, w2, b2, w3, b3)

    if pack is not None:
        y = y.reshape(B, out_dim)       # row-major view; no data movement
    return y


def multi_head_actor_forward(x, params, *, batch_tile=None, out_dtype=jnp.float32,
                             vmem_budget_bytes=_DEFAULT_VMEM_BUDGET):
    """x: [B, num_in] float32.  params: output of prepare_params() — weights
    transposed to [in, out] and pre-cast to bf16 once, biases [1, out] f32.
    Set out_dtype=jnp.bfloat16 to halve the y writeback if downstream allows."""
    B, num_in = x.shape
    hidden = params["w1"].shape[1]
    out_dim = params["w3"].shape[1]

    if batch_tile is None:
        batch_tile = _pick_batch_tile(B, num_in, hidden, out_dim, vmem_budget_bytes)
    batch_tile = max(1, min(batch_tile, B))
    if batch_tile < B:
        # avoid sublane-masked layouts for partial tiles (multiple of 16)
        batch_tile = min(B, _round_up(batch_tile, 16))

    vmem_limit = int(min(max(32 * 1024 * 1024, vmem_budget_bytes + (8 << 20)), 128 << 20))

    can_pack = (
        (out_dim * _PACK) % 128 == 0                       # packed rows are lane-dense
        and B % _PACK == 0
        and batch_tile % _PACK == 0
        and (batch_tile == B or (batch_tile // _PACK) % 8 == 0)
    )

    attempts = []
    if can_pack:
        attempts.append(dict(pack=_PACK, single_buffer=True))
    attempts.append(dict(pack=None, single_buffer=True))
    attempts.append(dict(pack=None, single_buffer=False))   # maximally conservative config

    last_err = None
    for cfg in attempts:
        try:
            return _forward_impl(x, params, batch_tile=batch_tile, out_dtype=out_dtype,
                                 vmem_limit_bytes=vmem_limit, **cfg)
        except Exception as e:
            # TODO(synk): the lane-dense packing needs a sublane-strided load +
            # minor-dim concat; if the local toolchain rejects that relayout (or
            # Buffered(1)), fall back to the plain layout so the kernel still runs.
            last_err = e
    raise last_err


# ---------------------------------------------------------------------------
# Params / reference
# ---------------------------------------------------------------------------
def init_params(key, num_in, num_out, hidden, heads):
    """nn.Linear-style uniform init; weights stored as [in, out] (pre-transposed)."""
    ks = jax.random.split(key, 6)

    def lin(kw, kb, fan_in, fan_out):
        bound = 1.0 / jnp.sqrt(fan_in)
        w = jax.random.uniform(kw, (fan_in, fan_out), jnp.float32, -bound, bound)
        b = jax.random.uniform(kb, (1, fan_out), jnp.float32, -bound, bound)
        return w, b

    w1, b1 = lin(ks[0], ks[1], num_in, hidden)
    w2, b2 = lin(ks[2], ks[3], hidden, hidden)
    w3, b3 = lin(ks[4], ks[5], hidden, num_out * heads)
    return dict(w1=w1, b1=b1, w2=w2, b2=b2, w3=w3, b3=b3)


def prepare_params(params):
    """One-time conversion of the weights to bf16 MXU operands; biases stay f32."""
    out = dict(params)
    for k in ("w1", "w2", "w3"):
        out[k] = params[k].astype(jnp.bfloat16)
    return out


def reference_forward(x, p):
    h1 = jnp.maximum(x @ p["w1"] + p["b1"], 0.0)
    h2 = jnp.maximum(h1 @ p["w2"] + p["b2"], 0.0)
    return jax.nn.sigmoid(h2 @ p["w3"] + p["b3"])


def action(y, num_out, head=-1):
    """MultiHeadActor.action applied to a precomputed forward output."""
    if head != -1:
        return y[:, head * num_out:(head + 1) * num_out]
    return y


# ---------------------------------------------------------------------------
# Demo / self-test
# ---------------------------------------------------------------------------
if __name__ == "__main__":
    num_in, num_out, hidden, heads = 32, 4, 32, 2
    out_dim = num_out * heads

    key = jax.random.PRNGKey(0)
    k_p, k1, k2, k3 = jax.random.split(key, 4)
    params = init_params(k_p, num_in, num_out, hidden, heads)
    kparams = prepare_params(params)            # bf16 weights prepared once, reused below

    # 1) small batch, single grid step, lane-dense packed output (B % 16 == 0)
    x = jax.random.normal(k1, (16, num_in), jnp.float32)
    y = jax.block_until_ready(multi_head_actor_forward(x, kparams))
    assert y.shape == (16, out_dim)
    assert jnp.allclose(y, reference_forward(x, params), atol=2e-2, rtol=2e-2)
    assert action(y, num_out, head=1).shape == (16, num_out)

    # 2) multi-step grid (4 "parallel" steps), packed output
    x2 = jax.random.normal(k2, (512, num_in), jnp.float32)
    y2 = jax.block_until_ready(multi_head_actor_forward(x2, kparams, batch_tile=128))
    assert jnp.allclose(y2, reference_forward(x2, params), atol=2e-2, rtol=2e-2)

    # 3) ragged batch, no jnp.pad pass: 200 = 3*64 + 8 -> masked edge tile
    x3 = jax.random.normal(k3, (200, num_in), jnp.float32)
    y3 = jax.block_until_ready(multi_head_actor_forward(x3, kparams, batch_tile=64))
    assert jnp.allclose(y3, reference_forward(x3, params), atol=2e-2, rtol=2e-2)

    print("KERNEL_OK")
</pallas_src>

<mosaic_0001>
module attributes {stable_mosaic.version = 11 : i64} {
  func.func @_packed_kernel(%arg0: i32, %arg1: memref<16x32xf32, #tpu.memory_space<vmem>>, %arg2: memref<32x32xbf16, #tpu.memory_space<vmem>>, %arg3: memref<1x32xf32, #tpu.memory_space<vmem>>, %arg4: memref<32x32xbf16, #tpu.memory_space<vmem>>, %arg5: memref<1x32xf32, #tpu.memory_space<vmem>>, %arg6: memref<32x8xbf16, #tpu.memory_space<vmem>>, %arg7: memref<1x8xf32, #tpu.memory_space<vmem>>, %arg8: memref<1x128xf32, #tpu.memory_space<vmem>>, %arg9: memref<16x8xf32, #tpu.memory_space<vmem>>) attributes {dimension_semantics = [#tpu.dimension_semantics<parallel>], iteration_bounds = array<i64: 1>, scalar_prefetch = 0 : i64, scratch_operands = 1 : i64, tpu.core_type = #tpu.core_type<tc>, window_params = [{transform_indices = @transform_0, window_bounds = array<i64: 16, 32>}, {pipeline_mode = #tpu.pipeline_mode<synchronous>, transform_indices = @transform_1, window_bounds = array<i64: 32, 32>}, {pipeline_mode = #tpu.pipeline_mode<synchronous>, transform_indices = @transform_2, window_bounds = array<i64: 1, 32>}, {pipeline_mode = #tpu.pipeline_mode<synchronous>, transform_indices = @transform_3, window_bounds = array<i64: 32, 32>}, {pipeline_mode = #tpu.pipeline_mode<synchronous>, transform_indices = @transform_4, window_bounds = array<i64: 1, 32>}, {pipeline_mode = #tpu.pipeline_mode<synchronous>, transform_indices = @transform_5, window_bounds = array<i64: 32, 8>}, {pipeline_mode = #tpu.pipeline_mode<synchronous>, transform_indices = @transform_6, window_bounds = array<i64: 1, 8>}, {transform_indices = @transform_7, window_bounds = array<i64: 1, 128>}]} {
    %c0 = arith.constant 0 : index
    %c0_0 = arith.constant 0 : index
    %0 = vector.load %arg1[%c0, %c0_0] : memref<16x32xf32, #tpu.memory_space<vmem>>, vector<16x32xf32>
    %1 = arith.truncf %0 : vector<16x32xf32> to vector<16x32xbf16>
    %c0_1 = arith.constant 0 : index
    %c0_2 = arith.constant 0 : index
    %2 = vector.load %arg2[%c0_1, %c0_2] : memref<32x32xbf16, #tpu.memory_space<vmem>>, vector<32x32xbf16>
    %cst = arith.constant dense<0.000000e+00> : vector<16x32xf32>
    %3 = tpu.matmul %1, %2, %cst {dimension_numbers = #tpu.dot_dimension_numbers<[1], [0], [0], [1], [0, 0, 1, 1], [], []>} : vector<16x32xbf16>, vector<32x32xbf16>, vector<16x32xf32> -> vector<16x32xf32>
    %c0_3 = arith.constant 0 : index
    %c0_4 = arith.constant 0 : index
    %4 = vector.load %arg3[%c0_3, %c0_4] : memref<1x32xf32, #tpu.memory_space<vmem>>, vector<1x32xf32>
    %5 = vector.broadcast %4 : vector<1x32xf32> to vector<16x32xf32>
    %6 = arith.addf %3, %5 : vector<16x32xf32>
    %cst_5 = arith.constant 0.000000e+00 : f32
    %7 = vector.broadcast %cst_5 : f32 to vector<16x32xf32>
    %8 = arith.maximumf %6, %7 : vector<16x32xf32>
    %9 = arith.truncf %8 : vector<16x32xf32> to vector<16x32xbf16>
    %c0_6 = arith.constant 0 : index
    %c0_7 = arith.constant 0 : index
    %10 = vector.load %arg4[%c0_6, %c0_7] : memref<32x32xbf16, #tpu.memory_space<vmem>>, vector<32x32xbf16>
    %cst_8 = arith.constant dense<0.000000e+00> : vector<16x32xf32>
    %11 = tpu.matmul %9, %10, %cst_8 {dimension_numbers = #tpu.dot_dimension_numbers<[1], [0], [0], [1], [0, 0, 1, 1], [], []>} : vector<16x32xbf16>, vector<32x32xbf16>, vector<16x32xf32> -> vector<16x32xf32>
    %c0_9 = arith.constant 0 : index
    %c0_10 = arith.constant 0 : index
    %12 = vector.load %arg5[%c0_9, %c0_10] : memref<1x32xf32, #tpu.memory_space<vmem>>, vector<1x32xf32>
    %13 = vector.broadcast %12 : vector<1x32xf32> to vector<16x32xf32>
    %14 = arith.addf %11, %13 : vector<16x32xf32>
    %cst_11 = arith.constant 0.000000e+00 : f32
    %15 = vector.broadcast %cst_11 : f32 to vector<16x32xf32>
    %16 = arith.maximumf %14, %15 : vector<16x32xf32>
    %17 = arith.truncf %16 : vector<16x32xf32> to vector<16x32xbf16>
    %c0_12 = arith.constant 0 : index
    %c0_13 = arith.constant 0 : index
    %18 = vector.load %arg6[%c0_12, %c0_13] : memref<32x8xbf16, #tpu.memory_space<vmem>>, vector<32x8xbf16>
    %cst_14 = arith.constant dense<0.000000e+00> : vector<16x8xf32>
    %19 = tpu.matmul %17, %18, %cst_14 {dimension_numbers = #tpu.dot_dimension_numbers<[1], [0], [0], [1], [0, 0, 1, 1], [], []>} : vector<16x32xbf16>, vector<32x8xbf16>, vector<16x8xf32> -> vector<16x8xf32>
    %c0_15 = arith.constant 0 : index
    %c0_16 = arith.constant 0 : index
    %20 = vector.load %arg7[%c0_15, %c0_16] : memref<1x8xf32, #tpu.memory_space<vmem>>, vector<1x8xf32>
    %21 = vector.broadcast %20 : vector<1x8xf32> to vector<16x8xf32>
    %22 = arith.addf %19, %21 : vector<16x8xf32>
    %23 = arith.negf %22 : vector<16x8xf32>
    %24 = math.exp %23 : vector<16x8xf32>
    %cst_17 = arith.constant 1.000000e+00 : f32
    %25 = vector.broadcast %cst_17 : f32 to vector<16x8xf32>
    %26 = arith.addf %25, %24 : vector<16x8xf32>
    %27 = arith.divf %25, %26 : vector<16x8xf32>
    %c0_18 = arith.constant 0 : index
    %c0_19 = arith.constant 0 : index
    %28 = vector.load %arg9[%c0_18, %c0_19] : memref<16x8xf32, #tpu.memory_space<vmem>>, vector<16x8xf32>
    tpu.vector_store %arg9[%c0_18, %c0_19], %27 {strides = array<i32>} : memref<16x8xf32, #tpu.memory_space<vmem>>, vector<16x8xf32>,
    %c0_20 = arith.constant 0 : index
    %c0_21 = arith.constant 0 : index
    %29 = tpu.strided_load %arg9[%c0_20, %c0_21] {strides = array<i32: 16, 1>} : memref<16x8xf32, #tpu.memory_space<vmem>>, vector<1x8xf32>
    %c1 = arith.constant 1 : index
    %c0_22 = arith.constant 0 : index
    %30 = tpu.strided_load %arg9[%c1, %c0_22] {strides = array<i32: 16, 1>} : memref<16x8xf32, #tpu.memory_space<vmem>>, vector<1x8xf32>
    %c2 = arith.constant 2 : index
    %c0_23 = arith.constant 0 : index
    %31 = tpu.strided_load %arg9[%c2, %c0_23] {strides = array<i32: 16, 1>} : memref<16x8xf32, #tpu.memory_space<vmem>>, vector<1x8xf32>
    %c3 = arith.constant 3 : index
    %c0_24 = arith.constant 0 : index
    %32 = tpu.strided_load %arg9[%c3, %c0_24] {strides = array<i32: 16, 1>} : memref<16x8xf32, #tpu.memory_space<vmem>>, vector<1x8xf32>
    %c4 = arith.constant 4 : index
    %c0_25 = arith.constant 0 : index
    %33 = tpu.strided_load %arg9[%c4, %c0_25] {strides = array<i32: 16, 1>} : memref<16x8xf32, #tpu.memory_space<vmem>>, vector<1x8xf32>
    %c5 = arith.constant 5 : index
    %c0_26 = arith.constant 0 : index
    %34 = tpu.strided_load %arg9[%c5, %c0_26] {strides = array<i32: 16, 1>} : memref<16x8xf32, #tpu.memory_space<vmem>>, vector<1x8xf32>
    %c6 = arith.constant 6 : index
    %c0_27 = arith.constant 0 : index
    %35 = tpu.strided_load %arg9[%c6, %c0_27] {strides = array<i32: 16, 1>} : memref<16x8xf32, #tpu.memory_space<vmem>>, vector<1x8xf32>
    %c7 = arith.constant 7 : index
    %c0_28 = arith.constant 0 : index
    %36 = tpu.strided_load %arg9[%c7, %c0_28] {strides = array<i32: 16, 1>} : memref<16x8xf32, #tpu.memory_space<vmem>>, vector<1x8xf32>
    %c8 = arith.constant 8 : index
    %c0_29 = arith.constant 0 : index
    %37 = tpu.strided_load %arg9[%c8, %c0_29] {strides = array<i32: 16, 1>} : memref<16x8xf32, #tpu.memory_space<vmem>>, vector<1x8xf32>
    %c9 = arith.constant 9 : index
    %c0_30 = arith.constant 0 : index
    %38 = tpu.strided_load %arg9[%c9, %c0_30] {strides = array<i32: 16, 1>} : memref<16x8xf32, #tpu.memory_space<vmem>>, vector<1x8xf32>
    %c10 = arith.constant 10 : index
    %c0_31 = arith.constant 0 : index
    %39 = tpu.strided_load %arg9[%c10, %c0_31] {strides = array<i32: 16, 1>} : memref<16x8xf32, #tpu.memory_space<vmem>>, vector<1x8xf32>
    %c11 = arith.constant 11 : index
    %c0_32 = arith.constant 0 : index
    %40 = tpu.strided_load %arg9[%c11, %c0_32] {strides = array<i32: 16, 1>} : memref<16x8xf32, #tpu.memory_space<vmem>>, vector<1x8xf32>
    %c12 = arith.constant 12 : index
    %c0_33 = arith.constant 0 : index
    %41 = tpu.strided_load %arg9[%c12, %c0_33] {strides = array<i32: 16, 1>} : memref<16x8xf32, #tpu.memory_space<vmem>>, vector<1x8xf32>
    %c13 = arith.constant 13 : index
    %c0_34 = arith.constant 0 : index
    %42 = tpu.strided_load %arg9[%c13, %c0_34] {strides = array<i32: 16, 1>} : memref<16x8xf32, #tpu.memory_space<vmem>>, vector<1x8xf32>
    %c14 = arith.constant 14 : index
    %c0_35 = arith.constant 0 : index
    %43 = tpu.strided_load %arg9[%c14, %c0_35] {strides = array<i32: 16, 1>} : memref<16x8xf32, #tpu.memory_space<vmem>>, vector<1x8xf32>
    %c15 = arith.constant 15 : index
    %c0_36 = arith.constant 0 : index
    %44 = tpu.strided_load %arg9[%c15, %c0_36] {strides = array<i32: 16, 1>} : memref<16x8xf32, #tpu.memory_space<vmem>>, vector<1x8xf32>
    %45 = tpu.concatenate %29, %30, %31, %32, %33, %34, %35, %36, %37, %38, %39, %40, %41, %42, %43, %44 in 1 : vector<1x8xf32>, vector<1x8xf32>, vector<1x8xf32>, vector<1x8xf32>, vector<1x8xf32>, vector<1x8xf32>, vector<1x8xf32>, vector<1x8xf32>, vector<1x8xf32>, vector<1x8xf32>, vector<1x8xf32>, vector<1x8xf32>, vector<1x8xf32>, vector<1x8xf32>, vector<1x8xf32>, vector<1x8xf32> -> vector<1x128xf32>
    %c0_37 = arith.constant 0 : index
    %c0_38 = arith.constant 0 : index
    %46 = vector.load %arg8[%c0_37, %c0_38] : memref<1x128xf32, #tpu.memory_space<vmem>>, vector<1x128xf32>
    tpu.vector_store %arg8[%c0_37, %c0_38], %45 {strides = array<i32>} : memref<1x128xf32, #tpu.memory_space<vmem>>, vector<1x128xf32>,
    return
  }
  func.func @transform_0(%arg0: i32) -> (i32, i32) {
    %c0_i32 = arith.constant 0 : i32
    %c0_i32_0 = arith.constant 0 : i32
    return %arg0, %c0_i32 : i32, i32
  }
  func.func @transform_1(%arg0: i32) -> (i32, i32) {
    %c0_i32 = arith.constant 0 : i32
    %c0_i32_0 = arith.constant 0 : i32
    %c0_i32_1 = arith.constant 0 : i32
    return %c0_i32, %c0_i32_0 : i32, i32
  }
  func.func @transform_2(%arg0: i32) -> (i32, i32) {
    %c0_i32 = arith.constant 0 : i32
    %c0_i32_0 = arith.constant 0 : i32
    %c0_i32_1 = arith.constant 0 : i32
    return %c0_i32, %c0_i32_0 : i32, i32
  }
  func.func @transform_3(%arg0: i32) -> (i32, i32) {
    %c0_i32 = arith.constant 0 : i32
    %c0_i32_0 = arith.constant 0 : i32
    %c0_i32_1 = arith.constant 0 : i32
    return %c0_i32, %c0_i32_0 : i32, i32
  }
  func.func @transform_4(%arg0: i32) -> (i32, i32) {
    %c0_i32 = arith.constant 0 : i32
    %c0_i32_0 = arith.constant 0 : i32
    %c0_i32_1 = arith.constant 0 : i32
    return %c0_i32, %c0_i32_0 : i32, i32
  }
  func.func @transform_5(%arg0: i32) -> (i32, i32) {
    %c0_i32 = arith.constant 0 : i32
    %c0_i32_0 = arith.constant 0 : i32
    %c0_i32_1 = arith.constant 0 : i32
    return %c0_i32, %c0_i32_0 : i32, i32
  }
  func.func @transform_6(%arg0: i32) -> (i32, i32) {
    %c0_i32 = arith.constant 0 : i32
    %c0_i32_0 = arith.constant 0 : i32
    %c0_i32_1 = arith.constant 0 : i32
    return %c0_i32, %c0_i32_0 : i32, i32
  }
  func.func @transform_7(%arg0: i32) -> (i32, i32) {
    %c0_i32 = arith.constant 0 : i32
    %c0_i32_0 = arith.constant 0 : i32
    return %arg0, %c0_i32 : i32, i32
  }
}

module attributes {stable_mosaic.version = 11 : i64} {
  func.func @_plain_kernel(%arg0: i32, %arg1: memref<16x32xf32, #tpu.memory_space<vmem>>, %arg2: memref<32x32xbf16, #tpu.memory_space<vmem>>, %arg3: memref<1x32xf32, #tpu.memory_space<vmem>>, %arg4: memref<32x32xbf16, #tpu.memory_space<vmem>>, %arg5: memref<1x32xf32, #tpu.memory_space<vmem>>, %arg6: memref<32x8xbf16, #tpu.memory_space<vmem>>, %arg7: memref<1x8xf32, #tpu.memory_space<vmem>>, %arg8: memref<16x8xf32, #tpu.memory_space<vmem>>) attributes {dimension_semantics = [#tpu.dimension_semantics<parallel>], iteration_bounds = array<i64: 1>, scalar_prefetch = 0 : i64, scratch_operands = 0 : i64, tpu.core_type = #tpu.core_type<tc>, window_params = [{transform_indices = @transform_0, window_bounds = array<i64: 16, 32>}, {pipeline_mode = #tpu.pipeline_mode<synchronous>, transform_indices = @transform_1, window_bounds = array<i64: 32, 32>}, {pipeline_mode = #tpu.pipeline_mode<synchronous>, transform_indices = @transform_2, window_bounds = array<i64: 1, 32>}, {pipeline_mode = #tpu.pipeline_mode<synchronous>, transform_indices = @transform_3, window_bounds = array<i64: 32, 32>}, {pipeline_mode = #tpu.pipeline_mode<synchronous>, transform_indices = @transform_4, window_bounds = array<i64: 1, 32>}, {pipeline_mode = #tpu.pipeline_mode<synchronous>, transform_indices = @transform_5, window_bounds = array<i64: 32, 8>}, {pipeline_mode = #tpu.pipeline_mode<synchronous>, transform_indices = @transform_6, window_bounds = array<i64: 1, 8>}, {transform_indices = @transform_7, window_bounds = array<i64: 16, 8>}]} {
    %c0 = arith.constant 0 : index
    %c0_0 = arith.constant 0 : index
    %0 = vector.load %arg1[%c0, %c0_0] : memref<16x32xf32, #tpu.memory_space<vmem>>, vector<16x32xf32>
    %1 = arith.truncf %0 : vector<16x32xf32> to vector<16x32xbf16>
    %c0_1 = arith.constant 0 : index
    %c0_2 = arith.constant 0 : index
    %2 = vector.load %arg2[%c0_1, %c0_2] : memref<32x32xbf16, #tpu.memory_space<vmem>>, vector<32x32xbf16>
    %cst = arith.constant dense<0.000000e+00> : vector<16x32xf32>
    %3 = tpu.matmul %1, %2, %cst {dimension_numbers = #tpu.dot_dimension_numbers<[1], [0], [0], [1], [0, 0, 1, 1], [], []>} : vector<16x32xbf16>, vector<32x32xbf16>, vector<16x32xf32> -> vector<16x32xf32>
    %c0_3 = arith.constant 0 : index
    %c0_4 = arith.constant 0 : index
    %4 = vector.load %arg3[%c0_3, %c0_4] : memref<1x32xf32, #tpu.memory_space<vmem>>, vector<1x32xf32>
    %5 = vector.broadcast %4 : vector<1x32xf32> to vector<16x32xf32>
    %6 = arith.addf %3, %5 : vector<16x32xf32>
    %cst_5 = arith.constant 0.000000e+00 : f32
    %7 = vector.broadcast %cst_5 : f32 to vector<16x32xf32>
    %8 = arith.maximumf %6, %7 : vector<16x32xf32>
    %9 = arith.truncf %8 : vector<16x32xf32> to vector<16x32xbf16>
    %c0_6 = arith.constant 0 : index
    %c0_7 = arith.constant 0 : index
    %10 = vector.load %arg4[%c0_6, %c0_7] : memref<32x32xbf16, #tpu.memory_space<vmem>>, vector<32x32xbf16>
    %cst_8 = arith.constant dense<0.000000e+00> : vector<16x32xf32>
    %11 = tpu.matmul %9, %10, %cst_8 {dimension_numbers = #tpu.dot_dimension_numbers<[1], [0], [0], [1], [0, 0, 1, 1], [], []>} : vector<16x32xbf16>, vector<32x32xbf16>, vector<16x32xf32> -> vector<16x32xf32>
    %c0_9 = arith.constant 0 : index
    %c0_10 = arith.constant 0 : index
    %12 = vector.load %arg5[%c0_9, %c0_10] : memref<1x32xf32, #tpu.memory_space<vmem>>, vector<1x32xf32>
    %13 = vector.broadcast %12 : vector<1x32xf32> to vector<16x32xf32>
    %14 = arith.addf %11, %13 : vector<16x32xf32>
    %cst_11 = arith.constant 0.000000e+00 : f32
    %15 = vector.broadcast %cst_11 : f32 to vector<16x32xf32>
    %16 = arith.maximumf %14, %15 : vector<16x32xf32>
    %17 = arith.truncf %16 : vector<16x32xf32> to vector<16x32xbf16>
    %c0_12 = arith.constant 0 : index
    %c0_13 = arith.constant 0 : index
    %18 = vector.load %arg6[%c0_12, %c0_13] : memref<32x8xbf16, #tpu.memory_space<vmem>>, vector<32x8xbf16>
    %cst_14 = arith.constant dense<0.000000e+00> : vector<16x8xf32>
    %19 = tpu.matmul %17, %18, %cst_14 {dimension_numbers = #tpu.dot_dimension_numbers<[1], [0], [0], [1], [0, 0, 1, 1], [], []>} : vector<16x32xbf16>, vector<32x8xbf16>, vector<16x8xf32> -> vector<16x8xf32>
    %c0_15 = arith.constant 0 : index
    %c0_16 = arith.constant 0 : index
    %20 = vector.load %arg7[%c0_15, %c0_16] : memref<1x8xf32, #tpu.memory_space<vmem>>, vector<1x8xf32>
    %21 = vector.broadcast %20 : vector<1x8xf32> to vector<16x8xf32>
    %22 = arith.addf %19, %21 : vector<16x8xf32>
    %23 = arith.negf %22 : vector<16x8xf32>
    %24 = math.exp %23 : vector<16x8xf32>
    %cst_17 = arith.constant 1.000000e+00 : f32
    %25 = vector.broadcast %cst_17 : f32 to vector<16x8xf32>
    %26 = arith.addf %25, %24 : vector<16x8xf32>
    %27 = arith.divf %25, %26 : vector<16x8xf32>
    %c0_18 = arith.constant 0 : index
    %c0_19 = arith.constant 0 : index
    %28 = vector.load %arg8[%c0_18, %c0_19] : memref<16x8xf32, #tpu.memory_space<vmem>>, vector<16x8xf32>
    tpu.vector_store %arg8[%c0_18, %c0_19], %27 {strides = array<i32>} : memref<16x8xf32, #tpu.memory_space<vmem>>, vector<16x8xf32>,
    return
  }
  func.func @transform_0(%arg0: i32) -> (i32, i32) {
    %c0_i32 = arith.constant 0 : i32
    %c0_i32_0 = arith.constant 0 : i32
    return %arg0, %c0_i32 : i32, i32
  }
  func.func @transform_1(%arg0: i32) -> (i32, i32) {
    %c0_i32 = arith.constant 0 : i32
    %c0_i32_0 = arith.constant 0 : i32
    %c0_i32_1 = arith.constant 0 : i32
    return %c0_i32, %c0_i32_0 : i32, i32
  }
  func.func @transform_2(%arg0: i32) -> (i32, i32) {
    %c0_i32 = arith.constant 0 : i32
    %c0_i32_0 = arith.constant 0 : i32
    %c0_i32_1 = arith.constant 0 : i32
    return %c0_i32, %c0_i32_0 : i32, i32
  }
  func.func @transform_3(%arg0: i32) -> (i32, i32) {
    %c0_i32 = arith.constant 0 : i32
    %c0_i32_0 = arith.constant 0 : i32
    %c0_i32_1 = arith.constant 0 : i32
    return %c0_i32, %c0_i32_0 : i32, i32
  }
  func.func @transform_4(%arg0: i32) -> (i32, i32) {
    %c0_i32 = arith.constant 0 : i32
    %c0_i32_0 = arith.constant 0 : i32
    %c0_i32_1 = arith.constant 0 : i32
    return %c0_i32, %c0_i32_0 : i32, i32
  }
  func.func @transform_5(%arg0: i32) -> (i32, i32) {
    %c0_i32 = arith.constant 0 : i32
    %c0_i32_0 = arith.constant 0 : i32
    %c0_i32_1 = arith.constant 0 : i32
    return %c0_i32, %c0_i32_0 : i32, i32
  }
  func.func @transform_6(%arg0: i32) -> (i32, i32) {
    %c0_i32 = arith.constant 0 : i32
    %c0_i32_0 = arith.constant 0 : i32
    %c0_i32_1 = arith.constant 0 : i32
    return %c0_i32, %c0_i32_0 : i32, i32
  }
  func.func @transform_7(%arg0: i32) -> (i32, i32) {
    %c0_i32 = arith.constant 0 : i32
    %c0_i32_0 = arith.constant 0 : i32
    return %arg0, %c0_i32 : i32, i32
  }
}

module attributes {stable_mosaic.version = 11 : i64} {
  func.func @_plain_kernel(%arg0: i32, %arg1: memref<16x32xf32, #tpu.memory_space<vmem>>, %arg2: memref<32x32xbf16, #tpu.memory_space<vmem>>, %arg3: memref<1x32xf32, #tpu.memory_space<vmem>>, %arg4: memref<32x32xbf16, #tpu.memory_space<vmem>>, %arg5: memref<1x32xf32, #tpu.memory_space<vmem>>, %arg6: memref<32x8xbf16, #tpu.memory_space<vmem>>, %arg7: memref<1x8xf32, #tpu.memory_space<vmem>>, %arg8: memref<16x8xf32, #tpu.memory_space<vmem>>) attributes {dimension_semantics = [#tpu.dimension_semantics<parallel>], iteration_bounds = array<i64: 1>, scalar_prefetch = 0 : i64, scratch_operands = 0 : i64, tpu.core_type = #tpu.core_type<tc>, window_params = [{transform_indices = @transform_0, window_bounds = array<i64: 16, 32>}, {pipeline_mode = #tpu.pipeline_mode<synchronous>, transform_indices = @transform_1, window_bounds = array<i64: 32, 32>}, {pipeline_mode = #tpu.pipeline_mode<synchronous>, transform_indices = @transform_2, window_bounds = array<i64: 1, 32>}, {pipeline_mode = #tpu.pipeline_mode<synchronous>, transform_indices = @transform_3, window_bounds = array<i64: 32, 32>}, {pipeline_mode = #tpu.pipeline_mode<synchronous>, transform_indices = @transform_4, window_bounds = array<i64: 1, 32>}, {pipeline_mode = #tpu.pipeline_mode<synchronous>, transform_indices = @transform_5, window_bounds = array<i64: 32, 8>}, {pipeline_mode = #tpu.pipeline_mode<synchronous>, transform_indices = @transform_6, window_bounds = array<i64: 1, 8>}, {transform_indices = @transform_7, window_bounds = array<i64: 16, 8>}]} {
    %c0 = arith.constant 0 : index
    %c0_0 = arith.constant 0 : index
    %0 = vector.load %arg1[%c0, %c0_0] : memref<16x32xf32, #tpu.memory_space<vmem>>, vector<16x32xf32>
    %1 = arith.truncf %0 : vector<16x32xf32> to vector<16x32xbf16>
    %c0_1 = arith.constant 0 : index
    %c0_2 = arith.constant 0 : index
    %2 = vector.load %arg2[%c0_1, %c0_2] : memref<32x32xbf16, #tpu.memory_space<vmem>>, vector<32x32xbf16>
    %cst = arith.constant dense<0.000000e+00> : vector<16x32xf32>
    %3 = tpu.matmul %1, %2, %cst {dimension_numbers = #tpu.dot_dimension_numbers<[1], [0], [0], [1], [0, 0, 1, 1], [], []>} : vector<16x32xbf16>, vector<32x32xbf16>, vector<16x32xf32> -> vector<16x32xf32>
    %c0_3 = arith.constant 0 : index
    %c0_4 = arith.constant 0 : index
    %4 = vector.load %arg3[%c0_3, %c0_4] : memref<1x32xf32, #tpu.memory_space<vmem>>, vector<1x32xf32>
    %5 = vector.broadcast %4 : vector<1x32xf32> to vector<16x32xf32>
    %6 = arith.addf %3, %5 : vector<16x32xf32>
    %cst_5 = arith.constant 0.000000e+00 : f32
    %7 = vector.broadcast %cst_5 : f32 to vector<16x32xf32>
    %8 = arith.maximumf %6, %7 : vector<16x32xf32>
    %9 = arith.truncf %8 : vector<16x32xf32> to vector<16x32xbf16>
    %c0_6 = arith.constant 0 : index
    %c0_7 = arith.constant 0 : index
    %10 = vector.load %arg4[%c0_6, %c0_7] : memref<32x32xbf16, #tpu.memory_space<vmem>>, vector<32x32xbf16>
    %cst_8 = arith.constant dense<0.000000e+00> : vector<16x32xf32>
    %11 = tpu.matmul %9, %10, %cst_8 {dimension_numbers = #tpu.dot_dimension_numbers<[1], [0], [0], [1], [0, 0, 1, 1], [], []>} : vector<16x32xbf16>, vector<32x32xbf16>, vector<16x32xf32> -> vector<16x32xf32>
    %c0_9 = arith.constant 0 : index
    %c0_10 = arith.constant 0 : index
    %12 = vector.load %arg5[%c0_9, %c0_10] : memref<1x32xf32, #tpu.memory_space<vmem>>, vector<1x32xf32>
    %13 = vector.broadcast %12 : vector<1x32xf32> to vector<16x32xf32>
    %14 = arith.addf %11, %13 : vector<16x32xf32>
    %cst_11 = arith.constant 0.000000e+00 : f32
    %15 = vector.broadcast %cst_11 : f32 to vector<16x32xf32>
    %16 = arith.maximumf %14, %15 : vector<16x32xf32>
    %17 = arith.truncf %16 : vector<16x32xf32> to vector<16x32xbf16>
    %c0_12 = arith.constant 0 : index
    %c0_13 = arith.constant 0 : index
    %18 = vector.load %arg6[%c0_12, %c0_13] : memref<32x8xbf16, #tpu.memory_space<vmem>>, vector<32x8xbf16>
    %cst_14 = arith.constant dense<0.000000e+00> : vector<16x8xf32>
    %19 = tpu.matmul %17, %18, %cst_14 {dimension_numbers = #tpu.dot_dimension_numbers<[1], [0], [0], [1], [0, 0, 1, 1], [], []>} : vector<16x32xbf16>, vector<32x8xbf16>, vector<16x8xf32> -> vector<16x8xf32>
    %c0_15 = arith.constant 0 : index
    %c0_16 = arith.constant 0 : index
    %20 = vector.load %arg7[%c0_15, %c0_16] : memref<1x8xf32, #tpu.memory_space<vmem>>, vector<1x8xf32>
    %21 = vector.broadcast %20 : vector<1x8xf32> to vector<16x8xf32>
    %22 = arith.addf %19, %21 : vector<16x8xf32>
    %23 = arith.negf %22 : vector<16x8xf32>
    %24 = math.exp %23 : vector<16x8xf32>
    %cst_17 = arith.constant 1.000000e+00 : f32
    %25 = vector.broadcast %cst_17 : f32 to vector<16x8xf32>
    %26 = arith.addf %25, %24 : vector<16x8xf32>
    %27 = arith.divf %25, %26 : vector<16x8xf32>
    %c0_18 = arith.constant 0 : index
    %c0_19 = arith.constant 0 : index
    %28 = vector.load %arg8[%c0_18, %c0_19] : memref<16x8xf32, #tpu.memory_space<vmem>>, vector<16x8xf32>
    tpu.vector_store %arg8[%c0_18, %c0_19], %27 {strides = array<i32>} : memref<16x8xf32, #tpu.memory_space<vmem>>, vector<16x8xf32>,
    return
  }
  func.func @transform_0(%arg0: i32) -> (i32, i32) {
    %c0_i32 = arith.constant 0 : i32
    %c0_i32_0 = arith.constant 0 : i32
    return %arg0, %c0_i32 : i32, i32
  }
  func.func @transform_1(%arg0: i32) -> (i32, i32) {
    %c0_i32 = arith.constant 0 : i32
    %c0_i32_0 = arith.constant 0 : i32
    %c0_i32_1 = arith.constant 0 : i32
    return %c0_i32, %c0_i32_0 : i32, i32
  }
  func.func @transform_2(%arg0: i32) -> (i32, i32) {
    %c0_i32 = arith.constant 0 : i32
    %c0_i32_0 = arith.constant 0 : i32
    %c0_i32_1 = arith.constant 0 : i32
    return %c0_i32, %c0_i32_0 : i32, i32
  }
  func.func @transform_3(%arg0: i32) -> (i32, i32) {
    %c0_i32 = arith.constant 0 : i32
    %c0_i32_0 = arith.constant 0 : i32
    %c0_i32_1 = arith.constant 0 : i32
    return %c0_i32, %c0_i32_0 : i32, i32
  }
  func.func @transform_4(%arg0: i32) -> (i32, i32) {
    %c0_i32 = arith.constant 0 : i32
    %c0_i32_0 = arith.constant 0 : i32
    %c0_i32_1 = arith.constant 0 : i32
    return %c0_i32, %c0_i32_0 : i32, i32
  }
  func.func @transform_5(%arg0: i32) -> (i32, i32) {
    %c0_i32 = arith.constant 0 : i32
    %c0_i32_0 = arith.constant 0 : i32
    %c0_i32_1 = arith.constant 0 : i32
    return %c0_i32, %c0_i32_0 : i32, i32
  }
  func.func @transform_6(%arg0: i32) -> (i32, i32) {
    %c0_i32 = arith.constant 0 : i32
    %c0_i32_0 = arith.constant 0 : i32
    %c0_i32_1 = arith.constant 0 : i32
    return %c0_i32, %c0_i32_0 : i32, i32
  }
  func.func @transform_7(%arg0: i32) -> (i32, i32) {
    %c0_i32 = arith.constant 0 : i32
    %c0_i32_0 = arith.constant 0 : i32
    return %arg0, %c0_i32 : i32, i32
  }
}

</mosaic_0001>

<bundles_post_ra>
// kernel: tpu_custom_call.1
= control target key start
LH: loop header
LB: loop body
LE: loop exit
PB: predicated region body
PF: predicated region fallthrough
CT: control target
= control target key end

     0   :  { %12 = vsyncpa [#allocation4], 0  ;;  %s702_s0 = inlined_call_operand.vmem [shape: f32[16,32], index: 0, kind: input, shape index: {}]   ;;  %s703_s1 = inlined_call_operand.hbm [shape: bf16[32,32], index: 1, kind: input, shape index: {}]   ;;  %s704_s2 = inlined_call_operand.vmem [shape: f32[1,32], index: 2, kind: input, shape index: {}]   ;;  %s705_s3 = inlined_call_operand.hbm [shape: bf16[32,32], index: 3, kind: input, shape index: {}]   ;;  %s706_s4 = inlined_call_operand.vmem [shape: f32[1,32], index: 4, kind: input, shape index: {}]   ;;  %s707_s5 = inlined_call_operand.vmem [shape: bf16[32,8], index: 5, kind: input, shape index: {}]   ;;  %s708_s6 = inlined_call_operand.vmem [shape: f32[1,8], index: 6, kind: input, shape index: {}]   ;;  %s709_s7 = inlined_call_operand.hbm [shape: f32[1,128], index: 7, kind: output, shape index: {}]  }
   0x1   :  { %13 = vsyncpa [#allocation7], 0 }
   0x2   :  { %14 = vsyncpa [#allocation5], 0  ;;  %s572_s24 = smov [#allocation3]   ;;  %s500_s28 = scalar_lea.hbm %s703_s1, 256 }
   0x3   :  { %s22_s25 = sshll.u32 %s572_s24, 4  ;;  %p501_p0 = scmp.ne.s32.totalorder %s703_s1, %s500_s28  ;;  %s23_s25 = int_to_ptr.vmem [resolvable:$true] %s22_s25 }
   0x4   :  { %p504_p1 = scmp.lt.u32.totalorder %s500_s28, %s703_s1 }
   0x6   :  { %p506_p2 = pnand %p504_p1, %p501_p0 }
   0x8   :  { %509 = shalt.err (!%p506_p2)
}
   0x9   :  { %s510_s10 = scalar_lea.vmem %s23_s25, 256  ;;  %p515_p4 = scmp.lt.s32.totalorder %s23_s25, %s23_s25 }
   0xa   :  { %p511_p3 = scmp.ne.s32.totalorder %s23_s25, %s510_s10  ;;  %p516_p5 = scmp.lt.s32.totalorder %s510_s10, %s510_s10 }
   0xc   :  { %p517_p6 = por %p516_p5, %p515_p4 }
   0xe   :  { %p518_p7 = pnand %p517_p6, %p511_p3 }
  0x10   :  { %521 = shalt.err (!%p518_p7)
}
  0x11   :  { %s573_s11 = smov 64   ;;  %s574_s12 = smov 4  }
  0x12   :  { %28 = dma.hbm_to_vmem [thread:$0]  %s703_s1, 256, %s23_s25, [#allocation4], %s573_s11, %s573_s11, %s574_s12  }
  0x13   :  { %s575_s15 = smov [#allocation6]   ;;  %s522_s19 = scalar_lea.hbm %s705_s3, 256 }
  0x14   :  { %s36_s16 = sshll.u32 %s575_s15, 4  ;;  %p523_p8 = scmp.ne.s32.totalorder %s705_s3, %s522_s19  ;;  %s37_s16 = int_to_ptr.vmem [resolvable:$true] %s36_s16 }
  0x15   :  { %p526_p9 = scmp.lt.u32.totalorder %s522_s19, %s705_s3 }
  0x17   :  { %p528_p10 = pnand %p526_p9, %p523_p8 }
  0x19   :  { %531 = shalt.err (!%p528_p10)
}
  0x1a   :  { %s532_s24 = scalar_lea.vmem %s37_s16, 256  ;;  %p537_p12 = scmp.lt.s32.totalorder %s37_s16, %s37_s16 }
  0x1b   :  { %p533_p11 = scmp.ne.s32.totalorder %s37_s16, %s532_s24  ;;  %p538_p13 = scmp.lt.s32.totalorder %s532_s24, %s532_s24 }
  0x1d   :  { %p539_p0 = por %p538_p13, %p537_p12 }
  0x1f   :  { %p540_p1 = pnand %p539_p0, %p533_p11 }
  0x21   :  { %543 = shalt.err (!%p540_p1)
}
  0x22   :  { %42 = dma.hbm_to_vmem [thread:$0]  %s705_s3, 256, %s37_s16, [#allocation7], %s573_s11, %s573_s11, %s574_s12  }
  0x23   :  { %566 = dma.done.wait [#allocation4], 256  }
  0x24   :  { %567 = vsyncadd [#allocation4], 4294967040 }
  0x25   :  { %568 = dma.done.wait [#allocation7], 256  }
  0x26   :  { %569 = vsyncadd [#allocation7], 4294967040  ;;  %v576_v0 = vmov 0.0   ;;  %vm577_vm0 = vmmov 0   ;;  %v486_v1 = vld [vmem:[#allocation3] sm:$0xff]   ;;  %v487_v2 = vld [vmem:[#allocation3 + $0x8] sm:$0xff]  }
  0x27   :  { %441 = vmatprep.subr.bf16.mxu0 %v576_v0  ;;  %445 = vmatprep.mubr.msk.bf16.mxu0 %vm577_vm0, %v576_v0  ;;  %v56_v3 = vld [vmem:[%s702_s0] sm:$0xff]  ;;  %v57_v4 = vld [vmem:[%s702_s0 + $0x8] sm:$0xff]  ;;  %vm82_vm1 = vcmask 261120   ;;  %vm279_vm2 = vcmask 64512   ;;  %s581_s15 = smov 16   ;;  %s582_s16 = smov 48  }
  0x28   :  { %449 = vmatprep.subr.bf16.mxu1 %v576_v0  ;;  %453 = vmatprep.mubr.msk.bf16.mxu1 %vm577_vm0, %v576_v0  ;;  %v58_v5 = vpack.c.bf16 %v57_v4, %v56_v3  ;;  %v488_v6 = vld [vmem:[#allocation6] sm:$0xff]   ;;  %v489_v7 = vld [vmem:[#allocation6 + $0x8] sm:$0xff]   ;;  %s583_s17 = smov 40   ;;  %s584_s18 = smov 56   ;;  %vm374_vm3 = vcmask 130048   ;;  %vm376_vm4 = vcmask 195584  }
  0x29   :  { %442 = vmatpush3.bf16.msra.mxu0 %v486_v1  ;;  %450 = vmatpush3.bf16.msra.mxu1 %v488_v6  ;;  %v418_v8 = vld [vmem:[%s704_s2] ss:$0 sm:$0xff]  ;;  %v491_v19 = vld [vmem:[%s707_s5 + $0x8] sm:$0xff]   ;;  %s585_s19 = smov 72   ;;  %s586_s20 = smov 80   ;;  %vm379_vm5 = vcmask 326656  }
  0x2a   :  { %443 = vmatprep.subr.bf16.mxu0 %v576_v0  ;;  %451 = vmatprep.subr.bf16.mxu1 %v576_v0  ;;  %v490_v18 = vld [vmem:[%s707_s5] sm:$0xff]   ;;  %s579_s5 = smov 8   ;;  %s587_s21 = smov 88   ;;  %vm381_vm6 = vcmask 392192   ;;  %vm383_vm7 = vcmask 457728   ;;  %vm385_vm8 = vcmask 523264  }
  0x2b   :  { %v422_v20 = vld [vmem:[%s706_s4] ss:$0 sm:$0xff]  ;;  %s578_s4 = smov 24   ;;  %s588_s22 = smov 96   ;;  %vm387_vm9 = vcmask 588800   ;;  %vm389_vm10 = vcmask 654336  }
  0x2c   :  { %v426_v30 = vld [vmem:[%s708_s6] ss:$0 sm:$0xff]  ;;  %s580_s6 = smov 32   ;;  %s589_s23 = smov 104   ;;  %vm391_vm11 = vcmask 719872   ;;  %vm393_vm12 = vcmask 785408  }
  0x2d   :  { %444 = vmatpush3.bf16.msra.mxu0 %v487_v2  ;;  %452 = vmatpush3.bf16.msra.mxu1 %v489_v7  ;;  %s590_s24 = smov 112   ;;  %vm395_vm13 = vcmask 850944   ;;  %vm397_vm14 = vcmask 916480   ;;  %s592_s1 = smov [#allocation8]   ;;  %vm399_vm15 = vcmask 982016  }
  0x2e   :  { %457 = vmatprep.subr.bf16.mxu0 %v576_v0  ;;  %s408_s25 = sshll.u32 %s592_s1, 4  ;;  %s409_s25 = int_to_ptr.vmem [resolvable:$true] %s408_s25 }
  0x2f   :  { %s544_s26 = scalar_lea.vmem %s409_s25, 16  ;;  %s548_s27 = scalar_lea.vmem %s409_s25, 32 }
  0x30   :  { %446 = vmatmul.mubr.msk.bf16.vlgmr.msra.gmra.mrb[0].mxu0 %vm82_vm1, %v58_v5  ;;  %p545_p2 = scmp.ne.s32.totalorder %s409_s25, %s544_s26  ;;  %p549_p3 = scmp.lt.s32.totalorder %s409_s25, %s409_s25 }
  0x31   :  { %461 = vmatprep.mubr.msk.bf16.mxu0 %vm577_vm0, %v576_v0  ;;  %458 = vmatpush3.bf16.msra.mxu0 %v490_v18  ;;  %p550_p4 = scmp.lt.s32.totalorder %s548_s27, %s544_s26 }
  0x32   :  { %459 = vmatprep.subr.bf16.mxu0 %v576_v0 }
  0x33   :  { %p551_p5 = por %p550_p4, %p549_p3 }
  0x35   :  { %460 = vmatpush3.bf16.msra.mxu0 %v491_v19  ;;  %p552_p6 = pnand %p551_p5, %p545_p2 }
 0x103   :  { %v120_v9 = vpop.f32.mrb[0].mxu0 }
 0x104   :  { %v121_v10 = vadd.f32 %v418_v8, %v120_v9  ;;  %v447_v11 = vpop.f32.mrb[1].mxu0 }
 0x105   :  { %v123_v12 = vpop.f32.mrb[2].mxu0 }
 0x106   :  { %v124_v13 = vadd.f32 %v418_v8, %v123_v12  ;;  %v448_v14 = vpop.f32.mrb[3].mxu0  ;;  %v127_v15 = vmax.f32 %v121_v10, 0.0 }
 0x108   :  { %v128_v16 = vmax.f32 %v124_v13, 0.0 }
 0x10a   :  { %v129_v17 = vpack.c.bf16 %v128_v16, %v127_v15 }
 0x10c   :  { %454 = vmatmul.mubr.msk.bf16.vlgmr.msra.gmra.mrb[0].mxu1 %vm82_vm1, %v129_v17 }
 0x1df   :  { %v190_v21 = vpop.f32.mrb[0].mxu1 }
 0x1e0   :  { %v191_v22 = vadd.f32 %v422_v20, %v190_v21  ;;  %v455_v23 = vpop.f32.mrb[1].mxu1 }
 0x1e1   :  { %v193_v24 = vpop.f32.mrb[2].mxu1 }
 0x1e2   :  { %v194_v25 = vadd.f32 %v422_v20, %v193_v24  ;;  %v456_v26 = vpop.f32.mrb[3].mxu1  ;;  %v197_v27 = vmax.f32 %v191_v22, 0.0 }
 0x1e4   :  { %v198_v28 = vmax.f32 %v194_v25, 0.0 }
 0x1e6   :  { %v199_v29 = vpack.c.bf16 %v198_v28, %v197_v27 }
 0x1e8   :  { %462 = vmatmul.mubr.msk.bf16.vlgmr.msra.gmra.mrb[4].mxu0 %vm82_vm1, %v199_v29 }
 0x2bb   :  { %v260_v31 = vpop.f32.mrb[4].mxu0 }
 0x2bc   :  { %v261_v32 = vadd.f32 %v426_v30, %v260_v31  ;;  %v463_v33 = vpop.f32.mrb[5].mxu0 }
 0x2bd   :  { %v263_v34 = vpop.f32.mrb[6].mxu0 }
 0x2be   :  { %v430_v35 = vmul.f32 -1.442695, %v261_v32  ;;  %v264_v36 = vadd.f32 %v426_v30, %v263_v34  ;;  %v464_v37 = vpop.f32.mrb[7].mxu0 }
 0x2c0   :  { %492 = vpow2.f32 %v430_v35  ;;  %v431_v38 = vmul.f32 -1.442695, %v264_v36 }
 0x2c2   :  { %494 = vpow2.f32 %v431_v38 }
 0x2ca   :  { %v493_v39 = vpop.eup %492 }
 0x2cb   :  { %v273_v40 = vadd.f32 1.0, %v493_v39 }
 0x2cc   :  { %v495_v41 = vpop.eup %494 }
 0x2cd   :  { %496 = vrcp.f32 %v273_v40  ;;  %v274_v42 = vadd.f32 1.0, %v495_v41 }
 0x2cf   :  { %498 = vrcp.f32 %v274_v42 }
 0x2d7   :  { %v497_v43 = vpop.eup %496 }
 0x2d8   :  { %280 = vst.msk [vmem:[#allocation2] sm:$0xff] %vm279_vm2, %v497_v43 }
 0x2d9   :  { %v499_v44 = vpop.eup %498 }
 0x2da   :  { %281 = vst.msk [vmem:[#allocation2 + $0x8] sm:$0xff] %vm279_vm2, %v499_v44 }
 0x2df   :  { %v288_v45 = vld [vmem:[#allocation2 + $0x3] ss:$16 sm:$0x1]  ;;  %v284_v46 = vld [vmem:[#allocation2 + $0x1] ss:$16 sm:$0x1] }
 0x2e0   :  { %322 = vrot.lane.b32.xlu1 %v288_v45, %s578_s4  ;;  %314 = vrot.lane.b32.xlu0 %v284_v46, %s579_s5  ;;  %v290_v47 = vld [vmem:[#allocation2 + $0x4] ss:$16 sm:$0x1]  ;;  %v286_v48 = vld [vmem:[#allocation2 + $0x2] ss:$16 sm:$0x1] }
 0x2e1   :  { %v294_v49 = vld [vmem:[#allocation2 + $0x6] ss:$16 sm:$0x1]  ;;  %v292_v50 = vld [vmem:[#allocation2 + $0x5] ss:$16 sm:$0x1] }
 0x2e2   :  { %v296_v51 = vld [vmem:[#allocation2 + $0x7] ss:$16 sm:$0x1]  ;;  %v298_v52 = vld [vmem:[#allocation2 + $0x8] ss:$16 sm:$0x1] }
 0x2e3   :  { %v300_v53 = vld [vmem:[#allocation2 + $0x9] ss:$16 sm:$0x1]  ;;  %v302_v54 = vld [vmem:[#allocation2 + $0xa] ss:$16 sm:$0x1] }
 0x2e4   :  { %326 = vrot.lane.b32.xlu1 %v290_v47, %s580_s6  ;;  %318 = vrot.lane.b32.xlu0 %v286_v48, %s581_s15  ;;  %v304_v55 = vld [vmem:[#allocation2 + $0xb] ss:$16 sm:$0x1]  ;;  %v306_v56 = vld [vmem:[#allocation2 + $0xc] ss:$16 sm:$0x1] }
 0x2e5   :  { %v308_v57 = vld [vmem:[#allocation2 + $0xd] ss:$16 sm:$0x1]  ;;  %v310_v58 = vld [vmem:[#allocation2 + $0xe] ss:$16 sm:$0x1] }
 0x2e6   :  { %v312_v59 = vld [vmem:[#allocation2 + $0xf] ss:$16 sm:$0x1]  ;;  %v282_v62 = vld [vmem:[#allocation2] ss:$16 sm:$0x1] }
 0x2e8   :  { %334 = vrot.lane.b32.xlu1 %v294_v49, %s582_s16  ;;  %330 = vrot.lane.b32.xlu0 %v292_v50, %s583_s17 }
 0x2ec   :  { %338 = vrot.lane.b32.xlu0 %v296_v51, %s584_s18  ;;  %342 = vrot.lane.b32.xlu1 %v298_v52, %s573_s11  ;;  %s591_s11 = smov 120  }
 0x2f0   :  { %346 = vrot.lane.b32.xlu0 %v300_v53, %s585_s19  ;;  %350 = vrot.lane.b32.xlu1 %v302_v54, %s586_s20 }
 0x2f4   :  { %354 = vrot.lane.b32.xlu0 %v304_v55, %s587_s21  ;;  %358 = vrot.lane.b32.xlu1 %v306_v56, %s588_s22 }
 0x2f8   :  { %362 = vrot.lane.b32.xlu0 %v308_v57, %s589_s23  ;;  %366 = vrot.lane.b32.xlu1 %v310_v58, %s590_s24 }
 0x2fc   :  { %370 = vrot.lane.b32.xlu0 %v312_v59, %s591_s11 }
 0x352   :  { %v323_v60 = vpop.permute.xlu1 %322  ;;  %v315_v61 = vpop.permute.xlu0 %314 }
 0x353   :  { %v373_v63 = vsel %vm279_vm2, %v282_v62, %v315_v61 }
 0x356   :  { %v327_v0 = vpop.permute.xlu1 %326  ;;  %v319_v1 = vpop.permute.xlu0 %318 }
 0x357   :  { %v375_v2 = vsel %vm374_vm3, %v373_v63, %v319_v1 }
 0x358   :  { %v377_v3 = vsel %vm376_vm4, %v375_v2, %v323_v60 }
 0x359   :  { %v378_v4 = vsel %vm82_vm1, %v377_v3, %v327_v0 }
 0x35a   :  { %v335_v5 = vpop.permute.xlu1 %334  ;;  %v331_v6 = vpop.permute.xlu0 %330 }
 0x35b   :  { %v380_v7 = vsel %vm379_vm5, %v378_v4, %v331_v6 }
 0x35c   :  { %v382_v9 = vsel %vm381_vm6, %v380_v7, %v335_v5 }
 0x35e   :  { %v339_v8 = vpop.permute.xlu0 %338  ;;  %v343_v10 = vpop.permute.xlu1 %342 }
 0x35f   :  { %v384_v11 = vsel %vm383_vm7, %v382_v9, %v339_v8 }
 0x360   :  { %v386_v12 = vsel %vm385_vm8, %v384_v11, %v343_v10 }
 0x362   :  { %v347_v13 = vpop.permute.xlu0 %346  ;;  %v351_v14 = vpop.permute.xlu1 %350 }
 0x363   :  { %v388_v15 = vsel %vm387_vm9, %v386_v12, %v347_v13 }
 0x364   :  { %v390_v16 = vsel %vm389_vm10, %v388_v15, %v351_v14 }
 0x366   :  { %v355_v17 = vpop.permute.xlu0 %354  ;;  %v359_v18 = vpop.permute.xlu1 %358 }
 0x367   :  { %v392_v19 = vsel %vm391_vm11, %v390_v16, %v355_v17 }
 0x368   :  { %v394_v20 = vsel %vm393_vm12, %v392_v19, %v359_v18 }
 0x36a   :  { %v363_v21 = vpop.permute.xlu0 %362  ;;  %v367_v23 = vpop.permute.xlu1 %366 }
 0x36b   :  { %v396_v22 = vsel %vm395_vm13, %v394_v20, %v363_v21 }
 0x36c   :  { %v398_v24 = vsel %vm397_vm14, %v396_v22, %v367_v23 }
 0x36e   :  { %v371_v25 = vpop.permute.xlu0 %370 }
 0x36f   :  { %v400_v26 = vsel %vm399_vm15, %v398_v24, %v371_v25 }
 0x370   :  { %401 = vst [vmem:[#allocation8] sm:$0x1] %v400_v26 }
 0x371   :  { %555 = shalt.err (!%p552_p6)
}
 0x372   :  { %s556_s3 = scalar_lea.hbm %s709_s7, 16 }
 0x373   :  { %p557_p7 = scmp.ne.s32.totalorder %s709_s7, %s556_s3  ;;  %p560_p8 = scmp.lt.u32.totalorder %s556_s3, %s709_s7 }
 0x375   :  { %p562_p9 = pnand %p560_p8, %p557_p7 }
 0x377   :  { %565 = shalt.err (!%p562_p9)
}
 0x378   :  { %411 = dma.vmem_to_hbm [thread:$0]  %s409_s25, 16, %s709_s7, [#allocation5]  }
 0x379   :  { %570 = dma.done.wait [#allocation5], 16  }
 0x37a   :  { %571 = vsyncadd [#allocation5], 4294967280 }
 0x37b   :  { %415 = vsyncpa [#allocation4], 1 }
 0x37c   :  { %416 = vsyncpa [#allocation7], 1 }
 0x37d   :  { %417 = vsyncpa [#allocation5], 1 }

// kernel: tpu_custom_call.1
= control target key start
LH: loop header
LB: loop body
LE: loop exit
PB: predicated region body
PF: predicated region fallthrough
CT: control target
= control target key end

     0   :  { %12 = vsyncpa [#allocation3], 0  ;;  %s502_s0 = inlined_call_operand.vmem [shape: f32[16,32], index: 0, kind: input, shape index: {}]   ;;  %s503_s1 = inlined_call_operand.hbm [shape: bf16[32,32], index: 1, kind: input, shape index: {}]   ;;  %s504_s2 = inlined_call_operand.vmem [shape: f32[1,32], index: 2, kind: input, shape index: {}]   ;;  %s505_s3 = inlined_call_operand.hbm [shape: bf16[32,32], index: 3, kind: input, shape index: {}]   ;;  %s506_s4 = inlined_call_operand.vmem [shape: f32[1,32], index: 4, kind: input, shape index: {}]   ;;  %s507_s5 = inlined_call_operand.vmem [shape: bf16[32,8], index: 5, kind: input, shape index: {}]   ;;  %s508_s6 = inlined_call_operand.vmem [shape: f32[1,8], index: 6, kind: input, shape index: {}]   ;;  %s509_s7 = inlined_call_operand.vmem [shape: f32[16,8], index: 7, kind: output, shape index: {}]  }
   0x1   :  { %13 = vsyncpa [#allocation5], 0  ;;  %s402_s24 = smov [#allocation2]   ;;  %s354_s28 = scalar_lea.hbm %s503_s1, 256 }
   0x2   :  { %s21_s25 = sshll.u32 %s402_s24, 4  ;;  %p355_p0 = scmp.ne.s32.totalorder %s503_s1, %s354_s28  ;;  %s22_s25 = int_to_ptr.vmem [resolvable:$true] %s21_s25 }
   0x3   :  { %p358_p1 = scmp.lt.u32.totalorder %s354_s28, %s503_s1 }
   0x5   :  { %p360_p2 = pnand %p358_p1, %p355_p0 }
   0x7   :  { %363 = shalt.err (!%p360_p2)
}
   0x8   :  { %s364_s10 = scalar_lea.vmem %s22_s25, 256  ;;  %p369_p4 = scmp.lt.s32.totalorder %s22_s25, %s22_s25 }
   0x9   :  { %p365_p3 = scmp.ne.s32.totalorder %s22_s25, %s364_s10  ;;  %p370_p5 = scmp.lt.s32.totalorder %s364_s10, %s364_s10 }
   0xb   :  { %p371_p6 = por %p370_p5, %p369_p4 }
   0xd   :  { %p372_p7 = pnand %p371_p6, %p365_p3 }
   0xf   :  { %375 = shalt.err (!%p372_p7)
}
  0x10   :  { %s403_s11 = smov 64   ;;  %s404_s12 = smov 4  }
  0x11   :  { %27 = dma.hbm_to_vmem [thread:$0]  %s503_s1, 256, %s22_s25, [#allocation3], %s403_s11, %s403_s11, %s404_s12  }
  0x12   :  { %s405_s15 = smov [#allocation4]   ;;  %s376_s19 = scalar_lea.hbm %s505_s3, 256 }
  0x13   :  { %s35_s16 = sshll.u32 %s405_s15, 4  ;;  %p377_p8 = scmp.ne.s32.totalorder %s505_s3, %s376_s19  ;;  %s36_s16 = int_to_ptr.vmem [resolvable:$true] %s35_s16 }
  0x14   :  { %p380_p9 = scmp.lt.u32.totalorder %s376_s19, %s505_s3 }
  0x16   :  { %p382_p10 = pnand %p380_p9, %p377_p8 }
  0x18   :  { %385 = shalt.err (!%p382_p10)
}
  0x19   :  { %s386_s24 = scalar_lea.vmem %s36_s16, 256  ;;  %p391_p12 = scmp.lt.s32.totalorder %s36_s16, %s36_s16 }
  0x1a   :  { %p387_p11 = scmp.ne.s32.totalorder %s36_s16, %s386_s24  ;;  %p392_p13 = scmp.lt.s32.totalorder %s386_s24, %s386_s24 }
  0x1c   :  { %p393_p0 = por %p392_p13, %p391_p12 }
  0x1e   :  { %p394_p1 = pnand %p393_p0, %p387_p11 }
  0x20   :  { %397 = shalt.err (!%p394_p1)
}
  0x21   :  { %41 = dma.hbm_to_vmem [thread:$0]  %s505_s3, 256, %s36_s16, [#allocation5], %s403_s11, %s403_s11, %s404_s12  }
  0x22   :  { %398 = dma.done.wait [#allocation3], 256  }
  0x23   :  { %399 = vsyncadd [#allocation3], 4294967040 }
  0x24   :  { %400 = dma.done.wait [#allocation5], 256  }
  0x25   :  { %401 = vsyncadd [#allocation5], 4294967040  ;;  %v406_v0 = vmov 0.0   ;;  %vm407_vm0 = vmmov 0   ;;  %v340_v1 = vld [vmem:[#allocation2] sm:$0xff]   ;;  %v341_v2 = vld [vmem:[#allocation2 + $0x8] sm:$0xff]  }
  0x26   :  { %310 = vmatprep.subr.bf16.mxu0 %v406_v0  ;;  %314 = vmatprep.mubr.msk.bf16.mxu0 %vm407_vm0, %v406_v0  ;;  %v55_v3 = vld [vmem:[%s502_s0] sm:$0xff]  ;;  %v56_v4 = vld [vmem:[%s502_s0 + $0x8] sm:$0xff]  ;;  %vm81_vm1 = vcmask 261120   ;;  %v342_v6 = vld [vmem:[#allocation4] sm:$0xff]   ;;  %vm278_vm2 = vcmask 64512  }
  0x27   :  { %318 = vmatprep.subr.bf16.mxu1 %v406_v0  ;;  %322 = vmatprep.mubr.msk.bf16.mxu1 %vm407_vm0, %v406_v0  ;;  %v57_v5 = vpack.c.bf16 %v56_v4, %v55_v3  ;;  %v343_v7 = vld [vmem:[#allocation4 + $0x8] sm:$0xff]   ;;  %v287_v8 = vld [vmem:[%s504_s2] ss:$0 sm:$0xff]  ;;  %v345_v19 = vld [vmem:[%s507_s5 + $0x8] sm:$0xff]  }
  0x28   :  { %311 = vmatpush3.bf16.msra.mxu0 %v340_v1  ;;  %319 = vmatpush3.bf16.msra.mxu1 %v342_v6  ;;  %v344_v18 = vld [vmem:[%s507_s5] sm:$0xff]  }
  0x29   :  { %312 = vmatprep.subr.bf16.mxu0 %v406_v0  ;;  %320 = vmatprep.subr.bf16.mxu1 %v406_v0  ;;  %v291_v20 = vld [vmem:[%s506_s4] ss:$0 sm:$0xff] }
  0x2a   :  { %v295_v30 = vld [vmem:[%s508_s6] ss:$0 sm:$0xff] }
  0x2c   :  { %313 = vmatpush3.bf16.msra.mxu0 %v341_v2  ;;  %321 = vmatpush3.bf16.msra.mxu1 %v343_v7 }
  0x2d   :  { %326 = vmatprep.subr.bf16.mxu0 %v406_v0 }
  0x2f   :  { %315 = vmatmul.mubr.msk.bf16.vlgmr.msra.gmra.mrb[0].mxu0 %vm81_vm1, %v57_v5 }
  0x30   :  { %330 = vmatprep.mubr.msk.bf16.mxu0 %vm407_vm0, %v406_v0  ;;  %327 = vmatpush3.bf16.msra.mxu0 %v344_v18 }
  0x31   :  { %328 = vmatprep.subr.bf16.mxu0 %v406_v0 }
  0x34   :  { %329 = vmatpush3.bf16.msra.mxu0 %v345_v19 }
 0x102   :  { %v119_v9 = vpop.f32.mrb[0].mxu0 }
 0x103   :  { %v120_v10 = vadd.f32 %v287_v8, %v119_v9  ;;  %v316_v11 = vpop.f32.mrb[1].mxu0 }
 0x104   :  { %v122_v12 = vpop.f32.mrb[2].mxu0 }
 0x105   :  { %v123_v13 = vadd.f32 %v287_v8, %v122_v12  ;;  %v317_v14 = vpop.f32.mrb[3].mxu0  ;;  %v126_v15 = vmax.f32 %v120_v10, 0.0 }
 0x107   :  { %v127_v16 = vmax.f32 %v123_v13, 0.0 }
 0x109   :  { %v128_v17 = vpack.c.bf16 %v127_v16, %v126_v15 }
 0x10b   :  { %323 = vmatmul.mubr.msk.bf16.vlgmr.msra.gmra.mrb[0].mxu1 %vm81_vm1, %v128_v17 }
 0x1de   :  { %v189_v21 = vpop.f32.mrb[0].mxu1 }
 0x1df   :  { %v190_v22 = vadd.f32 %v291_v20, %v189_v21  ;;  %v324_v23 = vpop.f32.mrb[1].mxu1 }
 0x1e0   :  { %v192_v24 = vpop.f32.mrb[2].mxu1 }
 0x1e1   :  { %v193_v25 = vadd.f32 %v291_v20, %v192_v24  ;;  %v325_v26 = vpop.f32.mrb[3].mxu1  ;;  %v196_v27 = vmax.f32 %v190_v22, 0.0 }
 0x1e3   :  { %v197_v28 = vmax.f32 %v193_v25, 0.0 }
 0x1e5   :  { %v198_v29 = vpack.c.bf16 %v197_v28, %v196_v27 }
 0x1e7   :  { %331 = vmatmul.mubr.msk.bf16.vlgmr.msra.gmra.mrb[4].mxu0 %vm81_vm1, %v198_v29 }
 0x2ba   :  { %v259_v31 = vpop.f32.mrb[4].mxu0 }
 0x2bb   :  { %v260_v32 = vadd.f32 %v295_v30, %v259_v31  ;;  %v332_v33 = vpop.f32.mrb[5].mxu0 }
 0x2bc   :  { %v262_v34 = vpop.f32.mrb[6].mxu0 }
 0x2bd   :  { %v299_v35 = vmul.f32 -1.442695, %v260_v32  ;;  %v263_v36 = vadd.f32 %v295_v30, %v262_v34  ;;  %v333_v37 = vpop.f32.mrb[7].mxu0 }
 0x2bf   :  { %346 = vpow2.f32 %v299_v35  ;;  %v300_v38 = vmul.f32 -1.442695, %v263_v36 }
 0x2c1   :  { %348 = vpow2.f32 %v300_v38 }
 0x2c9   :  { %v347_v39 = vpop.eup %346 }
 0x2ca   :  { %v272_v40 = vadd.f32 1.0, %v347_v39 }
 0x2cb   :  { %v349_v41 = vpop.eup %348 }
 0x2cc   :  { %350 = vrcp.f32 %v272_v40  ;;  %v273_v42 = vadd.f32 1.0, %v349_v41 }
 0x2ce   :  { %352 = vrcp.f32 %v273_v42 }
 0x2d6   :  { %v351_v43 = vpop.eup %350 }
 0x2d7   :  { %279 = vst.msk [vmem:[%s509_s7] sm:$0xff] %vm278_vm2, %v351_v43 }
 0x2d8   :  { %v353_v44 = vpop.eup %352 }
 0x2d9   :  { %280 = vst.msk [vmem:[%s509_s7 + $0x8] sm:$0xff] %vm278_vm2, %v353_v44 }
 0x2da   :  { %285 = vsyncpa [#allocation3], 1 }
 0x2db   :  { %286 = vsyncpa [#allocation5], 1 }

// kernel: tpu_custom_call.1
= control target key start
LH: loop header
LB: loop body
LE: loop exit
PB: predicated region body
PF: predicated region fallthrough
CT: control target
= control target key end

     0   :  { %12 = vsyncpa [#allocation3], 0  ;;  %s502_s0 = inlined_call_operand.vmem [shape: f32[16,32], index: 0, kind: input, shape index: {}]   ;;  %s503_s1 = inlined_call_operand.hbm [shape: bf16[32,32], index: 1, kind: input, shape index: {}]   ;;  %s504_s2 = inlined_call_operand.vmem [shape: f32[1,32], index: 2, kind: input, shape index: {}]   ;;  %s505_s3 = inlined_call_operand.hbm [shape: bf16[32,32], index: 3, kind: input, shape index: {}]   ;;  %s506_s4 = inlined_call_operand.vmem [shape: f32[1,32], index: 4, kind: input, shape index: {}]   ;;  %s507_s5 = inlined_call_operand.vmem [shape: bf16[32,8], index: 5, kind: input, shape index: {}]   ;;  %s508_s6 = inlined_call_operand.vmem [shape: f32[1,8], index: 6, kind: input, shape index: {}]   ;;  %s509_s7 = inlined_call_operand.vmem [shape: f32[16,8], index: 7, kind: output, shape index: {}]  }
   0x1   :  { %13 = vsyncpa [#allocation5], 0  ;;  %s402_s24 = smov [#allocation2]   ;;  %s354_s28 = scalar_lea.hbm %s503_s1, 256 }
   0x2   :  { %s21_s25 = sshll.u32 %s402_s24, 4  ;;  %p355_p0 = scmp.ne.s32.totalorder %s503_s1, %s354_s28  ;;  %s22_s25 = int_to_ptr.vmem [resolvable:$true] %s21_s25 }
   0x3   :  { %p358_p1 = scmp.lt.u32.totalorder %s354_s28, %s503_s1 }
   0x5   :  { %p360_p2 = pnand %p358_p1, %p355_p0 }
   0x7   :  { %363 = shalt.err (!%p360_p2)
}
   0x8   :  { %s364_s10 = scalar_lea.vmem %s22_s25, 256  ;;  %p369_p4 = scmp.lt.s32.totalorder %s22_s25, %s22_s25 }
   0x9   :  { %p365_p3 = scmp.ne.s32.totalorder %s22_s25, %s364_s10  ;;  %p370_p5 = scmp.lt.s32.totalorder %s364_s10, %s364_s10 }
   0xb   :  { %p371_p6 = por %p370_p5, %p369_p4 }
   0xd   :  { %p372_p7 = pnand %p371_p6, %p365_p3 }
   0xf   :  { %375 = shalt.err (!%p372_p7)
}
  0x10   :  { %s403_s11 = smov 64   ;;  %s404_s12 = smov 4  }
  0x11   :  { %27 = dma.hbm_to_vmem [thread:$0]  %s503_s1, 256, %s22_s25, [#allocation3], %s403_s11, %s403_s11, %s404_s12  }
  0x12   :  { %s405_s15 = smov [#allocation4]   ;;  %s376_s19 = scalar_lea.hbm %s505_s3, 256 }
  0x13   :  { %s35_s16 = sshll.u32 %s405_s15, 4  ;;  %p377_p8 = scmp.ne.s32.totalorder %s505_s3, %s376_s19  ;;  %s36_s16 = int_to_ptr.vmem [resolvable:$true] %s35_s16 }
  0x14   :  { %p380_p9 = scmp.lt.u32.totalorder %s376_s19, %s505_s3 }
  0x16   :  { %p382_p10 = pnand %p380_p9, %p377_p8 }
  0x18   :  { %385 = shalt.err (!%p382_p10)
}
  0x19   :  { %s386_s24 = scalar_lea.vmem %s36_s16, 256  ;;  %p391_p12 = scmp.lt.s32.totalorder %s36_s16, %s36_s16 }
  0x1a   :  { %p387_p11 = scmp.ne.s32.totalorder %s36_s16, %s386_s24  ;;  %p392_p13 = scmp.lt.s32.totalorder %s386_s24, %s386_s24 }
  0x1c   :  { %p393_p0 = por %p392_p13, %p391_p12 }
  0x1e   :  { %p394_p1 = pnand %p393_p0, %p387_p11 }
  0x20   :  { %397 = shalt.err (!%p394_p1)
}
  0x21   :  { %41 = dma.hbm_to_vmem [thread:$0]  %s505_s3, 256, %s36_s16, [#allocation5], %s403_s11, %s403_s11, %s404_s12  }
  0x22   :  { %398 = dma.done.wait [#allocation3], 256  }
  0x23   :  { %399 = vsyncadd [#allocation3], 4294967040 }
  0x24   :  { %400 = dma.done.wait [#allocation5], 256  }
  0x25   :  { %401 = vsyncadd [#allocation5], 4294967040  ;;  %v406_v0 = vmov 0.0   ;;  %vm407_vm0 = vmmov 0   ;;  %v340_v1 = vld [vmem:[#allocation2] sm:$0xff]   ;;  %v341_v2 = vld [vmem:[#allocation2 + $0x8] sm:$0xff]  }
  0x26   :  { %310 = vmatprep.subr.bf16.mxu0 %v406_v0  ;;  %314 = vmatprep.mubr.msk.bf16.mxu0 %vm407_vm0, %v406_v0  ;;  %v55_v3 = vld [vmem:[%s502_s0] sm:$0xff]  ;;  %v56_v4 = vld [vmem:[%s502_s0 + $0x8] sm:$0xff]  ;;  %vm81_vm1 = vcmask 261120   ;;  %v342_v6 = vld [vmem:[#allocation4] sm:$0xff]   ;;  %vm278_vm2 = vcmask 64512  }
  0x27   :  { %318 = vmatprep.subr.bf16.mxu1 %v406_v0  ;;  %322 = vmatprep.mubr.msk.bf16.mxu1 %vm407_vm0, %v406_v0  ;;  %v57_v5 = vpack.c.bf16 %v56_v4, %v55_v3  ;;  %v343_v7 = vld [vmem:[#allocation4 + $0x8] sm:$0xff]   ;;  %v287_v8 = vld [vmem:[%s504_s2] ss:$0 sm:$0xff]  ;;  %v345_v19 = vld [vmem:[%s507_s5 + $0x8] sm:$0xff]  }
  0x28   :  { %311 = vmatpush3.bf16.msra.mxu0 %v340_v1  ;;  %319 = vmatpush3.bf16.msra.mxu1 %v342_v6  ;;  %v344_v18 = vld [vmem:[%s507_s5] sm:$0xff]  }
  0x29   :  { %312 = vmatprep.subr.bf16.mxu0 %v406_v0  ;;  %320 = vmatprep.subr.bf16.mxu1 %v406_v0  ;;  %v291_v20 = vld [vmem:[%s506_s4] ss:$0 sm:$0xff] }
  0x2a   :  { %v295_v30 = vld [vmem:[%s508_s6] ss:$0 sm:$0xff] }
  0x2c   :  { %313 = vmatpush3.bf16.msra.mxu0 %v341_v2  ;;  %321 = vmatpush3.bf16.msra.mxu1 %v343_v7 }
  0x2d   :  { %326 = vmatprep.subr.bf16.mxu0 %v406_v0 }
  0x2f   :  { %315 = vmatmul.mubr.msk.bf16.vlgmr.msra.gmra.mrb[0].mxu0 %vm81_vm1, %v57_v5 }
  0x30   :  { %330 = vmatprep.mubr.msk.bf16.mxu0 %vm407_vm0, %v406_v0  ;;  %327 = vmatpush3.bf16.msra.mxu0 %v344_v18 }
  0x31   :  { %328 = vmatprep.subr.bf16.mxu0 %v406_v0 }
  0x34   :  { %329 = vmatpush3.bf16.msra.mxu0 %v345_v19 }
 0x102   :  { %v119_v9 = vpop.f32.mrb[0].mxu0 }
 0x103   :  { %v120_v10 = vadd.f32 %v287_v8, %v119_v9  ;;  %v316_v11 = vpop.f32.mrb[1].mxu0 }
 0x104   :  { %v122_v12 = vpop.f32.mrb[2].mxu0 }
 0x105   :  { %v123_v13 = vadd.f32 %v287_v8, %v122_v12  ;;  %v317_v14 = vpop.f32.mrb[3].mxu0  ;;  %v126_v15 = vmax.f32 %v120_v10, 0.0 }
 0x107   :  { %v127_v16 = vmax.f32 %v123_v13, 0.0 }
 0x109   :  { %v128_v17 = vpack.c.bf16 %v127_v16, %v126_v15 }
 0x10b   :  { %323 = vmatmul.mubr.msk.bf16.vlgmr.msra.gmra.mrb[0].mxu1 %vm81_vm1, %v128_v17 }
 0x1de   :  { %v189_v21 = vpop.f32.mrb[0].mxu1 }
 0x1df   :  { %v190_v22 = vadd.f32 %v291_v20, %v189_v21  ;;  %v324_v23 = vpop.f32.mrb[1].mxu1 }
 0x1e0   :  { %v192_v24 = vpop.f32.mrb[2].mxu1 }
 0x1e1   :  { %v193_v25 = vadd.f32 %v291_v20, %v192_v24  ;;  %v325_v26 = vpop.f32.mrb[3].mxu1  ;;  %v196_v27 = vmax.f32 %v190_v22, 0.0 }
 0x1e3   :  { %v197_v28 = vmax.f32 %v193_v25, 0.0 }
 0x1e5   :  { %v198_v29 = vpack.c.bf16 %v197_v28, %v196_v27 }
 0x1e7   :  { %331 = vmatmul.mubr.msk.bf16.vlgmr.msra.gmra.mrb[4].mxu0 %vm81_vm1, %v198_v29 }
 0x2ba   :  { %v259_v31 = vpop.f32.mrb[4].mxu0 }
 0x2bb   :  { %v260_v32 = vadd.f32 %v295_v30, %v259_v31  ;;  %v332_v33 = vpop.f32.mrb[5].mxu0 }
 0x2bc   :  { %v262_v34 = vpop.f32.mrb[6].mxu0 }
 0x2bd   :  { %v299_v35 = vmul.f32 -1.442695, %v260_v32  ;;  %v263_v36 = vadd.f32 %v295_v30, %v262_v34  ;;  %v333_v37 = vpop.f32.mrb[7].mxu0 }
 0x2bf   :  { %346 = vpow2.f32 %v299_v35  ;;  %v300_v38 = vmul.f32 -1.442695, %v263_v36 }
 0x2c1   :  { %348 = vpow2.f32 %v300_v38 }
 0x2c9   :  { %v347_v39 = vpop.eup %346 }
 0x2ca   :  { %v272_v40 = vadd.f32 1.0, %v347_v39 }
 0x2cb   :  { %v349_v41 = vpop.eup %348 }
 0x2cc   :  { %350 = vrcp.f32 %v272_v40  ;;  %v273_v42 = vadd.f32 1.0, %v349_v41 }
 0x2ce   :  { %352 = vrcp.f32 %v273_v42 }
 0x2d6   :  { %v351_v43 = vpop.eup %350 }
 0x2d7   :  { %279 = vst.msk [vmem:[%s509_s7] sm:$0xff] %vm278_vm2, %v351_v43 }
 0x2d8   :  { %v353_v44 = vpop.eup %352 }
 0x2d9   :  { %280 = vst.msk [vmem:[%s509_s7 + $0x8] sm:$0xff] %vm278_vm2, %v353_v44 }
 0x2da   :  { %285 = vsyncpa [#allocation3], 1 }
 0x2db   :  { %286 = vsyncpa [#allocation5], 1 }

</bundles_post_ra>
